<compile_context>
chip_gen: v5e
topology: v5e:2x2
jax: 0.10.0
libtpu: 0.0.40
codegen_flags: <defaults>
</compile_context>

<pallas_src>
import jax
import jax.numpy as jnp
from jax.experimental import pallas as pl
from jax.experimental.pallas import tpu as pltpu


def _cdiv(a, b):
    return -(-a // b)


# ----------------------------------------------------------------------------
# Fused kernel.
# ----------------------------------------------------------------------------
def cbow_fused_kernel(idx_ref, emb_hbm, w1_ref, b1_ref, w2_ref, b2_ref,
                      out_ref, x_buf, m_ref, sems):
    # idx_ref: (C,)    int32 SMEM (scalar prefetch)
    # emb_hbm: (V, E)  f32, raw HBM ref (only the C needed rows are gathered)
    # w1_ref:  (E, H)  bf16 VMEM, resident (constant index map)
    # b1_ref:  (1, H)  f32  VMEM, resident
    # w2_ref:  (H, TV) bf16 VMEM tile (double-buffered by the pipeline)
    # b2_ref:  (1, TV) f32  VMEM tile
    # out_ref: (1, TV) f32  output tile
    # x_buf:   (C_pad, E) f32 VMEM scratch (gathered embedding rows)
    # m_ref:   (1, H)  f32 VMEM scratch (hidden mean; persists across steps)
    # sems:    DMA semaphores, one per gathered row
    n_ctx = idx_ref.shape[0]          # true context length C (static)
    n_pad, e_dim = x_buf.shape        # C padded up to a sublane multiple

    @pl.when(pl.program_id(0) == 0)
    def _stage1():
        # Single store zeroes the padding rows (cheap insurance against stale
        # VMEM garbage; the row mask below is what guarantees correctness).
        if n_pad > n_ctx:
            x_buf[pl.ds(n_ctx, n_pad - n_ctx), :] = jnp.zeros(
                (n_pad - n_ctx, e_dim), x_buf.dtype)

        # Gather only the C needed embedding rows (C*E*4 bytes, not V*E*4):
        # issue all row DMAs, then wait for all of them.
        copies = []
        for c in range(n_ctx):
            cp = pltpu.make_async_copy(
                emb_hbm.at[pl.ds(idx_ref[c], 1), :],
                x_buf.at[pl.ds(c, 1), :],
                sems.at[c],
            )
            cp.start()
            copies.append(cp)
        for cp in copies:
            cp.wait()

        # h = relu(x @ W1^T + b1); bf16 MXU inputs, f32 accumulation.
        x = x_buf[...].astype(w1_ref.dtype)
        h = jnp.dot(x, w1_ref[...], preferred_element_type=jnp.float32)
        h = jnp.maximum(h + b1_ref[...], 0.0)                     # (C_pad, H)

        # Mask padded rows out of the context mean (mandatory: relu(b1) of a
        # zero input row is NOT zero) and fold 1/C into the scale.
        row_ids = jax.lax.broadcasted_iota(jnp.int32, h.shape, 0)
        h = jnp.where(row_ids < n_ctx, h, 0.0)
        m_ref[...] = jnp.sum(h, axis=0, keepdims=True) * (1.0 / n_ctx)

    # Stage 2 (every step): one lane-dense vocab tile of scores on the MXU.
    out_ref[...] = (
        jnp.dot(m_ref[...].astype(w2_ref.dtype), w2_ref[...],
                preferred_element_type=jnp.float32)
        + b2_ref[...]
    )


# ----------------------------------------------------------------------------
# One-time parameter prep + tile sizing (outside the forward).
# ----------------------------------------------------------------------------
def choose_vocab_tile(hidden_size, vocab_size, *, per_buffer_bytes=4 * 1024 * 1024):
    """Lane-dense vocab tile: large enough to escape per-grid-step overhead,
    small enough that a double-buffered bf16 W2 tile (~2 * per_buffer_bytes
    live) stays far inside v7x's 64 MiB VMEM (and v5e/v6e's 128 MiB).  Tiles
    are balanced so vocab padding waste is at most 127 columns."""
    v128 = _cdiv(vocab_size, 128) * 128
    tv_max = (per_buffer_bytes // (hidden_size * 2) // 128) * 128   # bf16 = 2 B
    tv_max = max(128, min(tv_max, 32 * 1024))
    n_tiles = _cdiv(v128, tv_max)
    return _cdiv(_cdiv(v128, n_tiles), 128) * 128


def prepare_params(w1, b1, w2, b2, *, tv):
    """One-time glue (NOT per forward call): transpose the Linear weights,
    cast the MXU-feeding weights to bf16, and pad the vocab axis to a whole
    number of tv-wide tiles so the kernel never sees a ragged tile and the
    forward never pads a V-sized array."""
    V = w2.shape[0]
    v_pad = _cdiv(V, tv) * tv
    w1_t = w1.T.astype(jnp.bfloat16)                  # (E, H)
    b1_2d = b1.reshape(1, -1).astype(jnp.float32)     # (1, H)
    w2_t = w2.T.astype(jnp.bfloat16)                  # (H, V)
    b2_2d = b2.reshape(1, -1).astype(jnp.float32)     # (1, V)
    if v_pad != V:
        w2_t = jnp.pad(w2_t, ((0, 0), (0, v_pad - V)))
        b2_2d = jnp.pad(b2_2d, ((0, 0), (0, v_pad - V)))
    return w1_t, b1_2d, w2_t, b2_2d


# ----------------------------------------------------------------------------
# Forward wrapper.
# ----------------------------------------------------------------------------
def cbow_forward(context_words, emb, w1_t, b1, w2_t, b2, *, vocab_size, tv):
    """CBOW forward as one fused Pallas TPU kernel.

    context_words: (C,) int32
    emb:   (V, E)  f32 embedding table (stays in HBM; only C rows gathered)
    w1_t:  (E, H)  bf16  = W1.T        b1: (1, H)  f32
    w2_t:  (H, Vp) bf16  = W2.T padded b2: (1, Vp) f32 padded
    Returns the (V,) score vector (no log_softmax, matching the PyTorch forward).
    """
    C = context_words.shape[0]
    E = emb.shape[1]
    H = w1_t.shape[1]
    v_pad = w2_t.shape[1]
    assert tv % 128 == 0 and v_pad % tv == 0, "prepare_params must match tv"
    c_pad = max(8, _cdiv(C, 8) * 8)

    # Explicit VMEM budget: streamed double-buffered tiles + resident small
    # operands + scratch, with 2x headroom for compiler-internal scratch and
    # layout padding; clamped to [16 MiB, 48 MiB] so it fits every generation
    # (v7x has 64 MiB physical VMEM per TensorCore).
    need = (2 * H * tv * 2          # W2 tiles (bf16, double-buffered)
            + 2 * tv * 4            # b2 tiles
            + 2 * tv * 4            # output tiles
            + E * H * 2 + H * 4     # resident W1 (bf16) + b1
            + c_pad * E * 4         # gathered embedding rows
            + H * 4)                # hidden mean scratch
    vmem_limit = min(max(2 * need, 16 * 1024 * 1024), 48 * 1024 * 1024)

    scores = pl.pallas_call(
        cbow_fused_kernel,
        out_shape=jax.ShapeDtypeStruct((1, v_pad), jnp.float32),
        grid_spec=pltpu.PrefetchScalarGridSpec(
            num_scalar_prefetch=1,                       # context indices -> SMEM
            grid=(v_pad // tv,),
            in_specs=[
                pl.BlockSpec(memory_space=pl.ANY),               # emb stays in HBM
                pl.BlockSpec((E, H), lambda j, idx: (0, 0)),     # W1^T (resident)
                pl.BlockSpec((1, H), lambda j, idx: (0, 0)),     # b1 (resident)
                pl.BlockSpec((H, tv), lambda j, idx: (0, j)),    # W2^T tile (streamed)
                pl.BlockSpec((1, tv), lambda j, idx: (0, j)),    # b2 tile
            ],
            out_specs=pl.BlockSpec((1, tv), lambda j, idx: (0, j)),
            scratch_shapes=[
                pltpu.VMEM((c_pad, E), jnp.float32),   # gathered embedding rows
                pltpu.VMEM((1, H), jnp.float32),       # hidden context mean
                pltpu.SemaphoreType.DMA((c_pad,)),     # one sem per row DMA
            ],
        ),
        compiler_params=pltpu.CompilerParams(
            # Must stay "arbitrary": the hidden mean lives in VMEM scratch
            # written at step 0, so the vocab axis cannot be sharded across
            # TensorCores (and at the HBM roofline both v7x cores would share
            # the same 3.2 TB/s HBM anyway — tile size + bf16 are the levers).
            dimension_semantics=("arbitrary",),
            vmem_limit_bytes=vmem_limit,
        ),
        cost_estimate=pl.CostEstimate(
            flops=2 * c_pad * E * H + 2 * H * v_pad,
            transcendentals=0,
            bytes_accessed=(C * 4                  # indices
                            + C * E * 4            # embedding gather
                            + E * H * 2 + H * 4    # W1 (bf16) + b1
                            + H * v_pad * 2        # W2 stream (bf16)
                            + v_pad * 4            # b2
                            + v_pad * 4),          # output
        ),
    )(context_words, emb, w1_t, b1, w2_t, b2)

    return scores[0, :vocab_size]


# ----------------------------------------------------------------------------
# Parameter init matching the PyTorch module, and a pure-JAX reference.
# ----------------------------------------------------------------------------
def init_params(key, vocab_size, embedding_size, hidden_layer_size):
    k_emb, k_w1, k_b1, k_w2, k_b2 = jax.random.split(key, 5)

    # nn.Embedding weight, then .uniform_(-initrange, initrange)
    initrange = 0.5 / embedding_size
    emb = jax.random.uniform(
        k_emb, (vocab_size, embedding_size), jnp.float32, -initrange, initrange)

    # nn.Linear default init: U(-1/sqrt(fan_in), 1/sqrt(fan_in))
    bound1 = 1.0 / (embedding_size ** 0.5)
    w1 = jax.random.uniform(
        k_w1, (hidden_layer_size, embedding_size), jnp.float32, -bound1, bound1)
    b1 = jax.random.uniform(
        k_b1, (hidden_layer_size,), jnp.float32, -bound1, bound1)

    bound2 = 1.0 / (hidden_layer_size ** 0.5)
    w2 = jax.random.uniform(
        k_w2, (vocab_size, hidden_layer_size), jnp.float32, -bound2, bound2)
    b2 = jax.random.uniform(
        k_b2, (vocab_size,), jnp.float32, -bound2, bound2)

    return emb, w1, b1, w2, b2


def reference_forward(context_words, emb, w1, b1, w2, b2):
    # Pure-JAX replica of the PyTorch module (y = x @ W.T + b), all f32.
    x = emb[context_words]                                                # (C, E)
    h = jnp.maximum(
        jnp.dot(x, w1.T, precision=jax.lax.Precision.HIGHEST) + b1, 0.0)  # (C, H)
    m = jnp.mean(h, axis=0)                                               # (H,)
    return jnp.dot(m, w2.T, precision=jax.lax.Precision.HIGHEST) + b2     # (V,)


if __name__ == "__main__":
    # Small but tiling-exercising shapes: V not a multiple of 128 (exercises
    # vocab padding/slicing) and C < 8 (exercises context-row padding/masking).
    vocab_size, embedding_size, hidden_layer_size = 500, 128, 128
    context_len = 5

    key = jax.random.PRNGKey(0)
    k_params, k_idx = jax.random.split(key)

    emb, w1, b1, w2, b2 = init_params(
        k_params, vocab_size, embedding_size, hidden_layer_size)

    context_words = jax.random.randint(
        k_idx, (context_len,), 0, vocab_size, dtype=jnp.int32)

    # One-time prep: tile sizing + transpose / bf16-cast / vocab padding.
    tv = choose_vocab_tile(hidden_layer_size, vocab_size)
    w1_t, b1_2d, w2_t, b2_2d = prepare_params(w1, b1, w2, b2, tv=tv)

    scores = cbow_forward(context_words, emb, w1_t, b1_2d, w2_t, b2_2d,
                          vocab_size=vocab_size, tv=tv)
    scores = jax.block_until_ready(scores)

    ref = reference_forward(context_words, emb, w1, b1, w2, b2)
    assert scores.shape == (vocab_size,)
    # Tolerance covers bf16 weight storage (W1/W2) with f32 MXU accumulation
    # vs. the all-f32 Precision.HIGHEST reference; observed error is O(1e-4).
    assert jnp.allclose(scores, ref, atol=2e-3, rtol=2e-3), float(
        jnp.max(jnp.abs(scores - ref)))

    print("KERNEL_OK")
</pallas_src>

<mosaic_0001>
module attributes {stable_mosaic.version = 11 : i64} {
  func.func @cbow_fused_kernel(%arg0: i32, %arg1: memref<5xi32, #tpu.memory_space<smem>>, %arg2: memref<500x128xf32, #tpu.memory_space<any>>, %arg3: memref<128x128xbf16, #tpu.memory_space<vmem>>, %arg4: memref<1x128xf32, #tpu.memory_space<vmem>>, %arg5: memref<128x512xbf16, #tpu.memory_space<vmem>>, %arg6: memref<1x512xf32, #tpu.memory_space<vmem>>, %arg7: memref<1x512xf32, #tpu.memory_space<vmem>>, %arg8: memref<8x128xf32, #tpu.memory_space<vmem>>, %arg9: memref<1x128xf32, #tpu.memory_space<vmem>>, %arg10: memref<8x!tpu.dma_semaphore, #tpu.memory_space<semaphore_mem>>) attributes {dimension_semantics = [#tpu.dimension_semantics<arbitrary>], iteration_bounds = array<i64: 1>, scalar_prefetch = 1 : i64, scratch_operands = 3 : i64, tpu.core_type = #tpu.core_type<tc>, window_params = [{}, {pipeline_mode = #tpu.pipeline_mode<synchronous>, transform_indices = @transform_1, window_bounds = array<i64: 128, 128>}, {pipeline_mode = #tpu.pipeline_mode<synchronous>, transform_indices = @transform_2, window_bounds = array<i64: 1, 128>}, {transform_indices = @transform_3, window_bounds = array<i64: 128, 512>}, {transform_indices = @transform_4, window_bounds = array<i64: 1, 512>}, {transform_indices = @transform_5, window_bounds = array<i64: 1, 512>}]} {
    %c0_i32 = arith.constant 0 : i32
    %0 = arith.cmpi eq, %arg0, %c0_i32 : i32
    %1 = arith.extui %0 : i1 to i32
    %c0_i32_0 = arith.constant 0 : i32
    %2 = arith.cmpi ne, %1, %c0_i32_0 : i32
    scf.if %2 {
      %cst_8 = arith.constant 0.000000e+00 : f32
      %10 = vector.broadcast %cst_8 : f32 to vector<3x128xf32>
      %c5 = arith.constant 5 : index
      %c0_9 = arith.constant 0 : index
      %11 = vector.load %arg8[%c5, %c0_9] : memref<8x128xf32, #tpu.memory_space<vmem>>, vector<3x128xf32>
      tpu.vector_store %arg8[%c5, %c0_9], %10 {strides = array<i32>} : memref<8x128xf32, #tpu.memory_space<vmem>>, vector<3x128xf32>,
      %c0_10 = arith.constant 0 : index
      %12 = memref.load %arg1[%c0_10] : memref<5xi32, #tpu.memory_space<smem>>
      %c0_i32_11 = arith.constant 0 : i32
      %c0_i32_12 = arith.constant 0 : i32
      %13 = tpu.memref_slice %arg2[%12, %c0_i32_12] : memref<500x128xf32, #tpu.memory_space<any>> -> memref<1x128xf32, #tpu.memory_space<any>>
      %c0_i32_13 = arith.constant 0 : i32
      %c0_i32_14 = arith.constant 0 : i32
      %14 = tpu.memref_slice %arg8[%c0_i32_13, %c0_i32_14] : memref<8x128xf32, #tpu.memory_space<vmem>> -> memref<1x128xf32, #tpu.memory_space<vmem>>
      %15 = tpu.memref_slice %arg10[%c0_i32_11] : memref<8x!tpu.dma_semaphore, #tpu.memory_space<semaphore_mem>> -> memref<1x!tpu.dma_semaphore, #tpu.memory_space<semaphore_mem>>
      %16 = tpu.memref_squeeze %15 : memref<1x!tpu.dma_semaphore, #tpu.memory_space<semaphore_mem>> -> memref<!tpu.dma_semaphore, #tpu.memory_space<semaphore_mem>>
      tpu.enqueue_dma source(%13 : memref<1x128xf32, #tpu.memory_space<any>>) target(%14 : memref<1x128xf32, #tpu.memory_space<vmem>>) target_semaphore(%16 : memref<!tpu.dma_semaphore, #tpu.memory_space<semaphore_mem>>)
      %c1 = arith.constant 1 : index
      %17 = memref.load %arg1[%c1] : memref<5xi32, #tpu.memory_space<smem>>
      %c1_i32 = arith.constant 1 : i32
      %c0_i32_15 = arith.constant 0 : i32
      %18 = tpu.memref_slice %arg2[%17, %c0_i32_15] : memref<500x128xf32, #tpu.memory_space<any>> -> memref<1x128xf32, #tpu.memory_space<any>>
      %c1_i32_16 = arith.constant 1 : i32
      %c0_i32_17 = arith.constant 0 : i32
      %19 = tpu.memref_slice %arg8[%c1_i32_16, %c0_i32_17] : memref<8x128xf32, #tpu.memory_space<vmem>> -> memref<1x128xf32, #tpu.memory_space<vmem>>
      %20 = tpu.memref_slice %arg10[%c1_i32] : memref<8x!tpu.dma_semaphore, #tpu.memory_space<semaphore_mem>> -> memref<1x!tpu.dma_semaphore, #tpu.memory_space<semaphore_mem>>
      %21 = tpu.memref_squeeze %20 : memref<1x!tpu.dma_semaphore, #tpu.memory_space<semaphore_mem>> -> memref<!tpu.dma_semaphore, #tpu.memory_space<semaphore_mem>>
      tpu.enqueue_dma source(%18 : memref<1x128xf32, #tpu.memory_space<any>>) target(%19 : memref<1x128xf32, #tpu.memory_space<vmem>>) target_semaphore(%21 : memref<!tpu.dma_semaphore, #tpu.memory_space<semaphore_mem>>)
      %c2 = arith.constant 2 : index
      %22 = memref.load %arg1[%c2] : memref<5xi32, #tpu.memory_space<smem>>
      %c2_i32 = arith.constant 2 : i32
      %c0_i32_18 = arith.constant 0 : i32
      %23 = tpu.memref_slice %arg2[%22, %c0_i32_18] : memref<500x128xf32, #tpu.memory_space<any>> -> memref<1x128xf32, #tpu.memory_space<any>>
      %c2_i32_19 = arith.constant 2 : i32
      %c0_i32_20 = arith.constant 0 : i32
      %24 = tpu.memref_slice %arg8[%c2_i32_19, %c0_i32_20] : memref<8x128xf32, #tpu.memory_space<vmem>> -> memref<1x128xf32, #tpu.memory_space<vmem>>
      %25 = tpu.memref_slice %arg10[%c2_i32] : memref<8x!tpu.dma_semaphore, #tpu.memory_space<semaphore_mem>> -> memref<1x!tpu.dma_semaphore, #tpu.memory_space<semaphore_mem>>
      %26 = tpu.memref_squeeze %25 : memref<1x!tpu.dma_semaphore, #tpu.memory_space<semaphore_mem>> -> memref<!tpu.dma_semaphore, #tpu.memory_space<semaphore_mem>>
      tpu.enqueue_dma source(%23 : memref<1x128xf32, #tpu.memory_space<any>>) target(%24 : memref<1x128xf32, #tpu.memory_space<vmem>>) target_semaphore(%26 : memref<!tpu.dma_semaphore, #tpu.memory_space<semaphore_mem>>)
      %c3 = arith.constant 3 : index
      %27 = memref.load %arg1[%c3] : memref<5xi32, #tpu.memory_space<smem>>
      %c3_i32 = arith.constant 3 : i32
      %c0_i32_21 = arith.constant 0 : i32
      %28 = tpu.memref_slice %arg2[%27, %c0_i32_21] : memref<500x128xf32, #tpu.memory_space<any>> -> memref<1x128xf32, #tpu.memory_space<any>>
      %c3_i32_22 = arith.constant 3 : i32
      %c0_i32_23 = arith.constant 0 : i32
      %29 = tpu.memref_slice %arg8[%c3_i32_22, %c0_i32_23] : memref<8x128xf32, #tpu.memory_space<vmem>> -> memref<1x128xf32, #tpu.memory_space<vmem>>
      %30 = tpu.memref_slice %arg10[%c3_i32] : memref<8x!tpu.dma_semaphore, #tpu.memory_space<semaphore_mem>> -> memref<1x!tpu.dma_semaphore, #tpu.memory_space<semaphore_mem>>
      %31 = tpu.memref_squeeze %30 : memref<1x!tpu.dma_semaphore, #tpu.memory_space<semaphore_mem>> -> memref<!tpu.dma_semaphore, #tpu.memory_space<semaphore_mem>>
      tpu.enqueue_dma source(%28 : memref<1x128xf32, #tpu.memory_space<any>>) target(%29 : memref<1x128xf32, #tpu.memory_space<vmem>>) target_semaphore(%31 : memref<!tpu.dma_semaphore, #tpu.memory_space<semaphore_mem>>)
      %c4 = arith.constant 4 : index
      %32 = memref.load %arg1[%c4] : memref<5xi32, #tpu.memory_space<smem>>
      %c4_i32 = arith.constant 4 : i32
      %c0_i32_24 = arith.constant 0 : i32
      %33 = tpu.memref_slice %arg2[%32, %c0_i32_24] : memref<500x128xf32, #tpu.memory_space<any>> -> memref<1x128xf32, #tpu.memory_space<any>>
      %c4_i32_25 = arith.constant 4 : i32
      %c0_i32_26 = arith.constant 0 : i32
      %34 = tpu.memref_slice %arg8[%c4_i32_25, %c0_i32_26] : memref<8x128xf32, #tpu.memory_space<vmem>> -> memref<1x128xf32, #tpu.memory_space<vmem>>
      %35 = tpu.memref_slice %arg10[%c4_i32] : memref<8x!tpu.dma_semaphore, #tpu.memory_space<semaphore_mem>> -> memref<1x!tpu.dma_semaphore, #tpu.memory_space<semaphore_mem>>
      %36 = tpu.memref_squeeze %35 : memref<1x!tpu.dma_semaphore, #tpu.memory_space<semaphore_mem>> -> memref<!tpu.dma_semaphore, #tpu.memory_space<semaphore_mem>>
      tpu.enqueue_dma source(%33 : memref<1x128xf32, #tpu.memory_space<any>>) target(%34 : memref<1x128xf32, #tpu.memory_space<vmem>>) target_semaphore(%36 : memref<!tpu.dma_semaphore, #tpu.memory_space<semaphore_mem>>)
      %c0_i32_27 = arith.constant 0 : i32
      %c0_i32_28 = arith.constant 0 : i32
      %37 = tpu.memref_slice %arg2[%12, %c0_i32_28] : memref<500x128xf32, #tpu.memory_space<any>> -> memref<1x128xf32, #tpu.memory_space<any>>
      %c0_i32_29 = arith.constant 0 : i32
      %c0_i32_30 = arith.constant 0 : i32
      %38 = tpu.memref_slice %arg8[%c0_i32_29, %c0_i32_30] : memref<8x128xf32, #tpu.memory_space<vmem>> -> memref<1x128xf32, #tpu.memory_space<vmem>>
      %39 = tpu.memref_slice %arg10[%c0_i32_27] : memref<8x!tpu.dma_semaphore, #tpu.memory_space<semaphore_mem>> -> memref<1x!tpu.dma_semaphore, #tpu.memory_space<semaphore_mem>>
      %40 = tpu.memref_squeeze %39 : memref<1x!tpu.dma_semaphore, #tpu.memory_space<semaphore_mem>> -> memref<!tpu.dma_semaphore, #tpu.memory_space<semaphore_mem>>
      tpu.wait_dma2 semaphore(%40 : memref<!tpu.dma_semaphore, #tpu.memory_space<semaphore_mem>>) src(%37 : memref<1x128xf32, #tpu.memory_space<any>>) dst(%38 : memref<1x128xf32, #tpu.memory_space<vmem>>)
      %c1_i32_31 = arith.constant 1 : i32
      %c0_i32_32 = arith.constant 0 : i32
      %41 = tpu.memref_slice %arg2[%17, %c0_i32_32] : memref<500x128xf32, #tpu.memory_space<any>> -> memref<1x128xf32, #tpu.memory_space<any>>
      %c1_i32_33 = arith.constant 1 : i32
      %c0_i32_34 = arith.constant 0 : i32
      %42 = tpu.memref_slice %arg8[%c1_i32_33, %c0_i32_34] : memref<8x128xf32, #tpu.memory_space<vmem>> -> memref<1x128xf32, #tpu.memory_space<vmem>>
      %43 = tpu.memref_slice %arg10[%c1_i32_31] : memref<8x!tpu.dma_semaphore, #tpu.memory_space<semaphore_mem>> -> memref<1x!tpu.dma_semaphore, #tpu.memory_space<semaphore_mem>>
      %44 = tpu.memref_squeeze %43 : memref<1x!tpu.dma_semaphore, #tpu.memory_space<semaphore_mem>> -> memref<!tpu.dma_semaphore, #tpu.memory_space<semaphore_mem>>
      tpu.wait_dma2 semaphore(%44 : memref<!tpu.dma_semaphore, #tpu.memory_space<semaphore_mem>>) src(%41 : memref<1x128xf32, #tpu.memory_space<any>>) dst(%42 : memref<1x128xf32, #tpu.memory_space<vmem>>)
      %c2_i32_35 = arith.constant 2 : i32
      %c0_i32_36 = arith.constant 0 : i32
      %45 = tpu.memref_slice %arg2[%22, %c0_i32_36] : memref<500x128xf32, #tpu.memory_space<any>> -> memref<1x128xf32, #tpu.memory_space<any>>
      %c2_i32_37 = arith.constant 2 : i32
      %c0_i32_38 = arith.constant 0 : i32
      %46 = tpu.memref_slice %arg8[%c2_i32_37, %c0_i32_38] : memref<8x128xf32, #tpu.memory_space<vmem>> -> memref<1x128xf32, #tpu.memory_space<vmem>>
      %47 = tpu.memref_slice %arg10[%c2_i32_35] : memref<8x!tpu.dma_semaphore, #tpu.memory_space<semaphore_mem>> -> memref<1x!tpu.dma_semaphore, #tpu.memory_space<semaphore_mem>>
      %48 = tpu.memref_squeeze %47 : memref<1x!tpu.dma_semaphore, #tpu.memory_space<semaphore_mem>> -> memref<!tpu.dma_semaphore, #tpu.memory_space<semaphore_mem>>
      tpu.wait_dma2 semaphore(%48 : memref<!tpu.dma_semaphore, #tpu.memory_space<semaphore_mem>>) src(%45 : memref<1x128xf32, #tpu.memory_space<any>>) dst(%46 : memref<1x128xf32, #tpu.memory_space<vmem>>)
      %c3_i32_39 = arith.constant 3 : i32
      %c0_i32_40 = arith.constant 0 : i32
      %49 = tpu.memref_slice %arg2[%27, %c0_i32_40] : memref<500x128xf32, #tpu.memory_space<any>> -> memref<1x128xf32, #tpu.memory_space<any>>
      %c3_i32_41 = arith.constant 3 : i32
      %c0_i32_42 = arith.constant 0 : i32
      %50 = tpu.memref_slice %arg8[%c3_i32_41, %c0_i32_42] : memref<8x128xf32, #tpu.memory_space<vmem>> -> memref<1x128xf32, #tpu.memory_space<vmem>>
      %51 = tpu.memref_slice %arg10[%c3_i32_39] : memref<8x!tpu.dma_semaphore, #tpu.memory_space<semaphore_mem>> -> memref<1x!tpu.dma_semaphore, #tpu.memory_space<semaphore_mem>>
      %52 = tpu.memref_squeeze %51 : memref<1x!tpu.dma_semaphore, #tpu.memory_space<semaphore_mem>> -> memref<!tpu.dma_semaphore, #tpu.memory_space<semaphore_mem>>
      tpu.wait_dma2 semaphore(%52 : memref<!tpu.dma_semaphore, #tpu.memory_space<semaphore_mem>>) src(%49 : memref<1x128xf32, #tpu.memory_space<any>>) dst(%50 : memref<1x128xf32, #tpu.memory_space<vmem>>)
      %c4_i32_43 = arith.constant 4 : i32
      %c0_i32_44 = arith.constant 0 : i32
      %53 = tpu.memref_slice %arg2[%32, %c0_i32_44] : memref<500x128xf32, #tpu.memory_space<any>> -> memref<1x128xf32, #tpu.memory_space<any>>
      %c4_i32_45 = arith.constant 4 : i32
      %c0_i32_46 = arith.constant 0 : i32
      %54 = tpu.memref_slice %arg8[%c4_i32_45, %c0_i32_46] : memref<8x128xf32, #tpu.memory_space<vmem>> -> memref<1x128xf32, #tpu.memory_space<vmem>>
      %55 = tpu.memref_slice %arg10[%c4_i32_43] : memref<8x!tpu.dma_semaphore, #tpu.memory_space<semaphore_mem>> -> memref<1x!tpu.dma_semaphore, #tpu.memory_space<semaphore_mem>>
      %56 = tpu.memref_squeeze %55 : memref<1x!tpu.dma_semaphore, #tpu.memory_space<semaphore_mem>> -> memref<!tpu.dma_semaphore, #tpu.memory_space<semaphore_mem>>
      tpu.wait_dma2 semaphore(%56 : memref<!tpu.dma_semaphore, #tpu.memory_space<semaphore_mem>>) src(%53 : memref<1x128xf32, #tpu.memory_space<any>>) dst(%54 : memref<1x128xf32, #tpu.memory_space<vmem>>)
      %c0_47 = arith.constant 0 : index
      %c0_48 = arith.constant 0 : index
      %57 = vector.load %arg8[%c0_47, %c0_48] : memref<8x128xf32, #tpu.memory_space<vmem>>, vector<8x128xf32>
      %58 = arith.truncf %57 : vector<8x128xf32> to vector<8x128xbf16>
      %c0_49 = arith.constant 0 : index
      %c0_50 = arith.constant 0 : index
      %59 = vector.load %arg3[%c0_49, %c0_50] : memref<128x128xbf16, #tpu.memory_space<vmem>>, vector<128x128xbf16>
      %cst_51 = arith.constant dense<0.000000e+00> : vector<8x128xf32>
      %60 = tpu.matmul %58, %59, %cst_51 {dimension_numbers = #tpu.dot_dimension_numbers<[1], [0], [0], [1], [0, 0, 1, 1], [], []>} : vector<8x128xbf16>, vector<128x128xbf16>, vector<8x128xf32> -> vector<8x128xf32>
      %c0_52 = arith.constant 0 : index
      %c0_53 = arith.constant 0 : index
      %61 = vector.load %arg4[%c0_52, %c0_53] : memref<1x128xf32, #tpu.memory_space<vmem>>, vector<1x128xf32>
      %62 = vector.broadcast %61 : vector<1x128xf32> to vector<8x128xf32>
      %63 = arith.addf %60, %62 : vector<8x128xf32>
      %cst_54 = arith.constant 0.000000e+00 : f32
      %64 = vector.broadcast %cst_54 : f32 to vector<8x128xf32>
      %65 = arith.maximumf %63, %64 : vector<8x128xf32>
      %66 = tpu.iota {dimensions = array<i32: 0>} : vector<8x128xi32>
      %c5_i32 = arith.constant 5 : i32
      %67 = vector.broadcast %c5_i32 : i32 to vector<8x128xi32>
      %68 = arith.cmpi slt, %66, %67 : vector<8x128xi32>
      %cst_55 = arith.constant 0.000000e+00 : f32
      %69 = vector.broadcast %cst_55 : f32 to vector<8x128xf32>
      %70 = arith.select %68, %65, %69 : vector<8x128xi1>, vector<8x128xf32>
      %cst_56 = arith.constant dense<0.000000e+00> : vector<128xf32>
      %71 = vector.multi_reduction <add>, %70, %cst_56 [0] : vector<8x128xf32> to vector<128xf32>
      %72 = vector.shape_cast %71 : vector<128xf32> to vector<1x128xf32>
      %cst_57 = arith.constant 2.000000e-01 : f32
      %73 = vector.broadcast %cst_57 : f32 to vector<1x128xf32>
      %74 = arith.mulf %72, %73 : vector<1x128xf32>
      %c0_58 = arith.constant 0 : index
      %c0_59 = arith.constant 0 : index
      %75 = vector.load %arg9[%c0_58, %c0_59] : memref<1x128xf32, #tpu.memory_space<vmem>>, vector<1x128xf32>
      tpu.vector_store %arg9[%c0_58, %c0_59], %74 {strides = array<i32>} : memref<1x128xf32, #tpu.memory_space<vmem>>, vector<1x128xf32>,
    } else {
    }
    %c0 = arith.constant 0 : index
    %c0_1 = arith.constant 0 : index
    %3 = vector.load %arg9[%c0, %c0_1] : memref<1x128xf32, #tpu.memory_space<vmem>>, vector<1x128xf32>
    %4 = arith.truncf %3 : vector<1x128xf32> to vector<1x128xbf16>
    %c0_2 = arith.constant 0 : index
    %c0_3 = arith.constant 0 : index
    %5 = vector.load %arg5[%c0_2, %c0_3] : memref<128x512xbf16, #tpu.memory_space<vmem>>, vector<128x512xbf16>
    %cst = arith.constant dense<0.000000e+00> : vector<1x512xf32>
    %6 = tpu.matmul %4, %5, %cst {dimension_numbers = #tpu.dot_dimension_numbers<[1], [0], [0], [1], [0, 0, 1, 1], [], []>} : vector<1x128xbf16>, vector<128x512xbf16>, vector<1x512xf32> -> vector<1x512xf32>
    %c0_4 = arith.constant 0 : index
    %c0_5 = arith.constant 0 : index
    %7 = vector.load %arg6[%c0_4, %c0_5] : memref<1x512xf32, #tpu.memory_space<vmem>>, vector<1x512xf32>
    %8 = arith.addf %6, %7 : vector<1x512xf32>
    %c0_6 = arith.constant 0 : index
    %c0_7 = arith.constant 0 : index
    %9 = vector.load %arg7[%c0_6, %c0_7] : memref<1x512xf32, #tpu.memory_space<vmem>>, vector<1x512xf32>
    tpu.vector_store %arg7[%c0_6, %c0_7], %8 {strides = array<i32>} : memref<1x512xf32, #tpu.memory_space<vmem>>, vector<1x512xf32>,
    return
  }
  func.func @transform_1(%arg0: i32, %arg1: memref<5xi32, #tpu.memory_space<smem>>) -> (i32, i32) {
    %c0_i32 = arith.constant 0 : i32
    %c0_i32_0 = arith.constant 0 : i32
    %c0_i32_1 = arith.constant 0 : i32
    return %c0_i32, %c0_i32_0 : i32, i32
  }
  func.func @transform_2(%arg0: i32, %arg1: memref<5xi32, #tpu.memory_space<smem>>) -> (i32, i32) {
    %c0_i32 = arith.constant 0 : i32
    %c0_i32_0 = arith.constant 0 : i32
    %c0_i32_1 = arith.constant 0 : i32
    return %c0_i32, %c0_i32_0 : i32, i32
  }
  func.func @transform_3(%arg0: i32, %arg1: memref<5xi32, #tpu.memory_space<smem>>) -> (i32, i32) {
    %c0_i32 = arith.constant 0 : i32
    %c0_i32_0 = arith.constant 0 : i32
    return %c0_i32, %arg0 : i32, i32
  }
  func.func @transform_4(%arg0: i32, %arg1: memref<5xi32, #tpu.memory_space<smem>>) -> (i32, i32) {
    %c0_i32 = arith.constant 0 : i32
    %c0_i32_0 = arith.constant 0 : i32
    return %c0_i32, %arg0 : i32, i32
  }
  func.func @transform_5(%arg0: i32, %arg1: memref<5xi32, #tpu.memory_space<smem>>) -> (i32, i32) {
    %c0_i32 = arith.constant 0 : i32
    %c0_i32_0 = arith.constant 0 : i32
    return %c0_i32, %arg0 : i32, i32
  }
}

</mosaic_0001>

<bundles_post_ra>
// kernel: tpu_custom_call.1
= control target key start
LH: loop header
LB: loop body
LE: loop exit
PB: predicated region body
PF: predicated region fallthrough
CT: control target
= control target key end

     0   :  { %s1095_s24 = smov [#allocation6]   ;;  %s1225_s0 = inlined_call_operand.hbm [shape: s32[5], index: 0, kind: input, shape index: {}]   ;;  %s1226_s1 = inlined_call_operand.hbm [shape: f32[500,128], index: 1, kind: input, shape index: {}]   ;;  %s1227_s2 = inlined_call_operand.hbm [shape: bf16[128,128], index: 2, kind: input, shape index: {}]   ;;  %s1228_s3 = inlined_call_operand.hbm [shape: f32[1,128], index: 3, kind: input, shape index: {}]   ;;  %s1229_s4 = inlined_call_operand.hbm [shape: bf16[128,512], index: 4, kind: input, shape index: {}]   ;;  %s1230_s5 = inlined_call_operand.vmem [shape: f32[1,512], index: 5, kind: input, shape index: {}]   ;;  %s1231_s6 = inlined_call_operand.hbm [shape: f32[1,512], index: 6, kind: output, shape index: {}]  }
   0x1   :  { %s12_s23 = sshll.u32 %s1225_s0, 4  ;;  %s13_s23 = int_to_ptr.hbm [resolvable:$true] %s12_s23 }
   0x2   :  { %15 = dma.hbm_to_smem %s13_s23, 16, %s1095_s24, [#allocation5] }
   0x3   :  { %1077 = dma.done.wait [#allocation5], 16 }
   0x4   :  { %1078 = vsyncadd [#allocation5], 4294967280 }
   0x5   :  { %18 = sfence }
   0x6   :  { %19 = vsyncpa [#allocation8], 0 }
   0x7   :  { %20 = vsyncpa [#allocation11], 0  ;;  %s40_s27 = sshll.u32 %s1228_s3, 4  ;;  %s41_s27 = int_to_ptr.hbm [resolvable:$true] %s40_s27 }
   0x8   :  { %21 = vsyncpa [#allocation9], 0  ;;  %s1096_s28 = smov [#allocation10]   ;;  %s26_s0 = sshll.u32 %s1227_s2, 4  ;;  %s27_s0 = int_to_ptr.hbm [resolvable:$true] %s26_s0 }
   0x9   :  { %s42_s29 = sshll.u32 %s1096_s28, 4  ;;  %s1097_s8 = smov [#allocation7]   ;;  %s43_s29 = int_to_ptr.vmem [resolvable:$true] %s42_s29 }
   0xa   :  { %45 = dma.hbm_to_vmem [thread:$0]  %s41_s27, 16, %s43_s29, [#allocation11]  }
   0xb   :  { %s28_s9 = sshll.u32 %s1097_s8, 4  ;;  %s1098_s10 = smov 64   ;;  %s29_s9 = int_to_ptr.vmem [resolvable:$true] %s28_s9 }
   0xc   :  { %s1099_s11 = smov 4   ;;  %s50_s3 = sshll.u32 %s1229_s4, 4  ;;  %s51_s3 = int_to_ptr.hbm [resolvable:$true] %s50_s3 }
   0xd   :  { %34 = dma.hbm_to_vmem [thread:$0]  %s27_s0, 1024, %s29_s9, [#allocation8], %s1098_s10, %s1098_s10, %s1099_s11  }
   0xe   :  { %s1100_s14 = smov [#allocation12]   ;;  %s1101_s16 = smov 256  }
   0xf   :  { %s52_s15 = sshll.u32 %s1100_s14, 4  ;;  %s1102_s17 = smov 16   ;;  %s53_s15 = int_to_ptr.vmem [resolvable:$true] %s52_s15 }
  0x10   :  { %58 = dma.hbm_to_vmem [thread:$0]  %s51_s3, 4096, %s53_s15, [#allocation11], %s1101_s16, %s1101_s16, %s1102_s17  }
  0x11   :  { %1079 = dma.done.wait [#allocation8], 1024  }
  0x12   :  { %1080 = vsyncadd [#allocation8], 4294966272 }
  0x13   :  { %1081 = dma.done.wait [#allocation11], 4112  }
  0x14   :  { %1082 = vsyncadd [#allocation11], 4294963184  ;;  %v1103_v0 = vmov 0.0   ;;  %s78_s2 = sld [smem:[#allocation6]]  ;;  %s1104_s18 = smov [#allocation2]  }
  0x15   :  { %77 = vst [vmem:[#allocation2 + $0x5] sm:$0x7] %v1103_v0  ;;  %s1157_s19 = sshll.u32 %s1104_s18, 4  ;;  %s621_s4 = sld [smem:[#allocation6 + $0x1]]  ;;  %s90_s19 = int_to_ptr.vmem [resolvable:$true] %s1157_s19 }
  0x16   :  { %s1105_s20 = smov [#allocation2 + $0x1]   ;;  %s1162_s22 = sld [smem:[#allocation6 + $0x2]] }
  0x17   :  { %s1160_s21 = sshll.u32 %s1105_s20, 4  ;;  %s1106_s23 = smov [#allocation2 + $0x2]   ;;  %s107_s21 = int_to_ptr.vmem [resolvable:$true] %s1160_s21 }
  0x18   :  { %s1165_s24 = sshll.u32 %s1106_s23, 4  ;;  %s1167_s25 = sld [smem:[#allocation6 + $0x3]]  ;;  %s124_s24 = int_to_ptr.vmem [resolvable:$true] %s1165_s24 }
  0x19   :  { %s1107_s29 = smov [#allocation2 + $0x3]   ;;  %s1181_s14 = scalar_lea.hbm %s1226_s1, 504 }
  0x1a   :  { %s79_s28 = scalar_lea.hbm %s1226_s1, %s78_s2  ;;  %s1173_s30 = sshll.u32 %s1107_s29, 4  ;;  %s141_s30 = int_to_ptr.vmem [resolvable:$true] %s1173_s30 }
  0x1b   :  { %s87_s7 = sshll.u32 %s79_s28, 4  ;;  %s94_s9 = scalar_lea.hbm %s1226_s1, %s621_s4  ;;  %s88_s7 = int_to_ptr.hbm [resolvable:$true] %s87_s7 }
  0x1c   :  { %s104_s10 = sshll.u32 %s94_s9, 4  ;;  %s933_s11 = sshra.s32 %s88_s7, 4  ;;  %s934_s11 = int_to_ptr.hbm [resolvable:$true] %s933_s11  ;;  %s105_s10 = int_to_ptr.hbm [resolvable:$true] %s104_s10 }
  0x1d   :  { %s935_s12 = scalar_lea.hbm %s934_s11, 1  ;;  %p938_p1 = scmp.lt.s32.totalorder %s934_s11, %s1226_s1 }
  0x1e   :  { %p936_p0 = scmp.ne.s32.totalorder %s934_s11, %s935_s12  ;;  %p939_p2 = scmp.lt.s32.totalorder %s1181_s14, %s935_s12 }
  0x20   :  { %p940_p3 = por %p939_p2, %p938_p1 }
  0x22   :  { %p941_p4 = pnand %p940_p3, %p936_p0 }
  0x24   :  { %944 = shalt.err (!%p941_p4)  }
  0x25   :  { %92 = dma.hbm_to_vmem [thread:$0]  %s88_s7, 16, %s90_s19, [#allocation4] }
  0x26   :  { %s111_s18 = scalar_lea.hbm %s1226_s1, %s1162_s22  ;;  %s957_s4 = sshra.s32 %s105_s10, 4  ;;  %s958_s4 = int_to_ptr.hbm [resolvable:$true] %s957_s4 }
  0x27   :  { %s959_s20 = scalar_lea.hbm %s958_s4, 1  ;;  %p962_p6 = scmp.lt.s32.totalorder %s958_s4, %s1226_s1 }
  0x28   :  { %p960_p5 = scmp.ne.s32.totalorder %s958_s4, %s959_s20  ;;  %p963_p7 = scmp.lt.s32.totalorder %s1181_s14, %s959_s20 }
  0x2a   :  { %p964_p8 = por %p963_p7, %p962_p6 }
  0x2c   :  { %p965_p9 = pnand %p964_p8, %p960_p5 }
  0x2e   :  { %968 = shalt.err (!%p965_p9)  }
  0x2f   :  { %109 = dma.hbm_to_vmem [thread:$0]  %s105_s10, 16, %s107_s21, [#allocation4 + $0x1] }
  0x30   :  { %s121_s19 = sshll.u32 %s111_s18, 4  ;;  %s128_s28 = scalar_lea.hbm %s1226_s1, %s1167_s25  ;;  %s122_s19 = int_to_ptr.hbm [resolvable:$true] %s121_s19 }
  0x31   :  { %s138_s29 = sshll.u32 %s128_s28, 4  ;;  %s981_s7 = sshra.s32 %s122_s19, 4  ;;  %s982_s7 = int_to_ptr.hbm [resolvable:$true] %s981_s7  ;;  %s139_s29 = int_to_ptr.hbm [resolvable:$true] %s138_s29 }
  0x32   :  { %s983_s0 = scalar_lea.hbm %s982_s7, 1  ;;  %p986_p11 = scmp.lt.s32.totalorder %s982_s7, %s1226_s1 }
  0x33   :  { %p984_p10 = scmp.ne.s32.totalorder %s982_s7, %s983_s0  ;;  %p987_p12 = scmp.lt.s32.totalorder %s1181_s14, %s983_s0 }
  0x35   :  { %p988_p13 = por %p987_p12, %p986_p11 }
  0x37   :  { %p989_p0 = pnand %p988_p13, %p984_p10 }
  0x39   :  { %992 = shalt.err (!%p989_p0)  }
  0x3a   :  { %126 = dma.hbm_to_vmem [thread:$0]  %s122_s19, 16, %s124_s24, [#allocation4 + $0x2] }
  0x3b   :  { %s1005_s21 = sshra.s32 %s139_s29, 4  ;;  %s1006_s21 = int_to_ptr.hbm [resolvable:$true] %s1005_s21 }
  0x3c   :  { %s1007_s25 = scalar_lea.hbm %s1006_s21, 1  ;;  %p1010_p2 = scmp.lt.s32.totalorder %s1006_s21, %s1226_s1 }
  0x3d   :  { %p1008_p1 = scmp.ne.s32.totalorder %s1006_s21, %s1007_s25  ;;  %p1011_p3 = scmp.lt.s32.totalorder %s1181_s14, %s1007_s25 }
  0x3f   :  { %p1012_p4 = por %p1011_p3, %p1010_p2 }
  0x41   :  { %p1013_p5 = pnand %p1012_p4, %p1008_p1 }
  0x43   :  { %1016 = shalt.err (!%p1013_p5)  }
  0x44   :  { %143 = dma.hbm_to_vmem [thread:$0]  %s139_s29, 16, %s141_s30, [#allocation4 + $0x3] }
  0x45   :  { %s624_s12 = sld [smem:[#allocation6 + $0x4]]  ;;  %s1108_s13 = smov [#allocation2 + $0x4]  }
  0x46   :  { %s157_s3 = sshll.u32 %s1108_s13, 4  ;;  %s158_s3 = int_to_ptr.vmem [resolvable:$true] %s157_s3 }
  0x4b   :  { %s145_s16 = scalar_lea.hbm %s1226_s1, %s624_s12 }
  0x4c   :  { %s155_s17 = sshll.u32 %s145_s16, 4  ;;  %s156_s17 = int_to_ptr.hbm [resolvable:$true] %s155_s17 }
  0x4d   :  { %s1029_s2 = sshra.s32 %s156_s17, 4  ;;  %s1030_s2 = int_to_ptr.hbm [resolvable:$true] %s1029_s2 }
  0x4e   :  { %s1031_s18 = scalar_lea.hbm %s1030_s2, 1  ;;  %p1034_p7 = scmp.lt.s32.totalorder %s1030_s2, %s1226_s1 }
  0x4f   :  { %p1032_p6 = scmp.ne.s32.totalorder %s1030_s2, %s1031_s18  ;;  %p1035_p8 = scmp.lt.s32.totalorder %s1181_s14, %s1031_s18 }
  0x51   :  { %p1036_p9 = por %p1035_p8, %p1034_p7 }
  0x53   :  { %p1037_p10 = pnand %p1036_p9, %p1032_p6 }
  0x55   :  { %1040 = shalt.err (!%p1037_p10)  }
  0x56   :  { %160 = dma.hbm_to_vmem [thread:$0]  %s156_s17, 16, %s158_s3, [#allocation4 + $0x4] }
  0x57   :  { %1083 = dma.done.wait [#allocation4], 16 }
  0x58   :  { %1084 = vsyncadd [#allocation4], 4294967280 }
  0x59   :  { %1085 = dma.done.wait [#allocation4 + $0x1], 16 }
  0x5a   :  { %1086 = vsyncadd [#allocation4 + $0x1], 4294967280 }
  0x5b   :  { %1087 = dma.done.wait [#allocation4 + $0x2], 16 }
  0x5c   :  { %1088 = vsyncadd [#allocation4 + $0x2], 4294967280 }
  0x5d   :  { %1089 = dma.done.wait [#allocation4 + $0x3], 16 }
  0x5e   :  { %1090 = vsyncadd [#allocation4 + $0x3], 4294967280 }
  0x5f   :  { %1091 = dma.done.wait [#allocation4 + $0x4], 16 }
  0x60   :  { %1092 = vsyncadd [#allocation4 + $0x4], 4294967280  ;;  %v800_v1 = vld [vmem:[#allocation7 + $0x38] sm:$0xff]  ;;  %v799_v2 = vld [vmem:[#allocation7 + $0x30] sm:$0xff]  ;;  %vm531_vm1 = vcmask 1040384   ;;  %vm533_vm2 = vcmask 1042434  }
  0x61   :  { %242 = vmatpush.bf16.msra.mxu0 %v800_v1  ;;  %v771_v3 = vld [vmem:[#allocation12 + $0xe0] sm:$0xf]  ;;  %v831_v4 = vld [vmem:[#allocation12 + $0xec] sm:$0xf0]  ;;  %v829_v5 = vld [vmem:[#allocation12 + $0xe4] sm:$0xf] }
  0x62   :  { %v772_v6 = vor.u32 %v831_v4, %v771_v3  ;;  %v773_v7 = vld [vmem:[#allocation12 + $0xf0] sm:$0xf0]  ;;  %v779_v8 = vld [vmem:[#allocation12 + $0xe8] sm:$0xf]  ;;  %v832_v9 = vld [vmem:[#allocation12 + $0xf4] sm:$0xf0] }
  0x63   :  { %v776_v10 = vor.u32 %v829_v5, %v773_v7  ;;  %v780_v11 = vor.u32 %v832_v9, %v779_v8  ;;  %v798_v12 = vld [vmem:[#allocation7 + $0x28] sm:$0xff]  ;;  %v797_v13 = vld [vmem:[#allocation7 + $0x20] sm:$0xff]  ;;  %v796_v14 = vld [vmem:[#allocation7 + $0x18] sm:$0xff]  ;;  %s1109_s14 = smov [#allocation13]   ;;  %s550_s19 = sshll.u32 %s1231_s6, 4  ;;  %vm535_vm3 = vcmask 1041408   ;;  %s551_s19 = int_to_ptr.hbm [resolvable:$true] %s550_s19 }
  0x64   :  { %472 = vmatpush.bf16.msra.mxu1 %v772_v6  ;;  %v795_v15 = vld [vmem:[#allocation7 + $0x10] sm:$0xff]  ;;  %v794_v16 = vld [vmem:[#allocation7 + $0x8] sm:$0xff]  ;;  %v781_v18 = vld [vmem:[#allocation12 + $0xf8] sm:$0xf0]  ;;  %s548_s23 = sshll.u32 %s1109_s14, 4  ;;  %s549_s23 = int_to_ptr.vmem [resolvable:$true] %s548_s23 }
  0x65   :  { %243 = vmatpush.bf16.msra.mxu0 %v799_v2  ;;  %485 = vmatpush.bf16.msra.mxu2 %v776_v10  ;;  %v830_v17 = vld [vmem:[#allocation12 + $0xec] sm:$0xf]  ;;  %v793_v19 = vld [vmem:[#allocation7] sm:$0xff]  ;;  %v172_v20 = vld [vmem:[#allocation2] sm:$0xff] }
  0x66   :  { %498 = vmatpush.bf16.msra.mxu3 %v780_v11  ;;  %v784_v21 = vor.u32 %v830_v17, %v781_v18  ;;  %v173_v22 = vpack.c.bf16 %v172_v20, %v172_v20  ;;  %v755_v23 = vld [vmem:[#allocation12 + $0xc0] sm:$0xf]  ;;  %v827_v24 = vld [vmem:[#allocation12 + $0xcc] sm:$0xf0]  ;;  %v825_v25 = vld [vmem:[#allocation12 + $0xc4] sm:$0xf] }
  0x67   :  { %v756_v26 = vor.u32 %v827_v24, %v755_v23  ;;  %v757_v27 = vld [vmem:[#allocation12 + $0xd0] sm:$0xf0]  ;;  %v763_v28 = vld [vmem:[#allocation12 + $0xc8] sm:$0xf]  ;;  %v828_v29 = vld [vmem:[#allocation12 + $0xd4] sm:$0xf0] }
  0x68   :  { %v760_v30 = vor.u32 %v825_v25, %v757_v27  ;;  %v764_v31 = vor.u32 %v828_v29, %v763_v28  ;;  %v826_v32 = vld [vmem:[#allocation12 + $0xcc] sm:$0xf]  ;;  %v765_v33 = vld [vmem:[#allocation12 + $0xd8] sm:$0xf0]  ;;  %v739_v35 = vld [vmem:[#allocation12 + $0xa0] sm:$0xf] }
  0x69   :  { %244 = vmatpush.bf16.msra.mxu0 %v798_v12  ;;  %473 = vmatpush.bf16.msra.mxu1 %v756_v26  ;;  %v768_v34 = vor.u32 %v826_v32, %v765_v33  ;;  %v823_v36 = vld [vmem:[#allocation12 + $0xac] sm:$0xf0]  ;;  %v821_v38 = vld [vmem:[#allocation12 + $0xa4] sm:$0xf]  ;;  %v741_v39 = vld [vmem:[#allocation12 + $0xb0] sm:$0xf0] }
  0x6a   :  { %486 = vmatpush.bf16.msra.mxu2 %v760_v30  ;;  %499 = vmatpush.bf16.msra.mxu3 %v764_v31  ;;  %v740_v37 = vor.u32 %v823_v36, %v739_v35  ;;  %v747_v40 = vld [vmem:[#allocation12 + $0xa8] sm:$0xf]  ;;  %v744_v41 = vor.u32 %v821_v38, %v741_v39  ;;  %v824_v42 = vld [vmem:[#allocation12 + $0xb4] sm:$0xf0]  ;;  %v822_v43 = vld [vmem:[#allocation12 + $0xac] sm:$0xf] }
  0x6b   :  { %v749_v44 = vld [vmem:[#allocation12 + $0xb8] sm:$0xf0]  ;;  %v748_v45 = vor.u32 %v824_v42, %v747_v40  ;;  %v723_v47 = vld [vmem:[#allocation12 + $0x80] sm:$0xf]  ;;  %v819_v48 = vld [vmem:[#allocation12 + $0x8c] sm:$0xf0]  ;;  %v256_v42 = vlaneseq }
  0x6c   :  { %v752_v46 = vor.u32 %v822_v43, %v749_v44  ;;  %v817_v49 = vld [vmem:[#allocation12 + $0x84] sm:$0xf]  ;;  %v724_v50 = vor.u32 %v819_v48, %v723_v47  ;;  %v725_v51 = vld [vmem:[#allocation12 + $0x90] sm:$0xf0]  ;;  %v731_v52 = vld [vmem:[#allocation12 + $0x88] sm:$0xf] }
  0x6d   :  { %245 = vmatpush.bf16.msra.mxu0 %v797_v13  ;;  %474 = vmatpush.bf16.msra.mxu1 %v740_v37  ;;  %v820_v53 = vld [vmem:[#allocation12 + $0x94] sm:$0xf0]  ;;  %v728_v54 = vor.u32 %v817_v49, %v725_v51  ;;  %v818_v56 = vld [vmem:[#allocation12 + $0x8c] sm:$0xf]  ;;  %v733_v57 = vld [vmem:[#allocation12 + $0x98] sm:$0xf0] }
  0x6e   :  { %487 = vmatpush.bf16.msra.mxu2 %v744_v41  ;;  %500 = vmatpush.bf16.msra.mxu3 %v748_v45  ;;  %v732_v55 = vor.u32 %v820_v53, %v731_v52  ;;  %v736_v58 = vor.u32 %v818_v56, %v733_v57  ;;  %v707_v59 = vld [vmem:[#allocation12 + $0x60] sm:$0xf]  ;;  %v815_v60 = vld [vmem:[#allocation12 + $0x6c] sm:$0xf0]  ;;  %v813_v61 = vld [vmem:[#allocation12 + $0x64] sm:$0xf] }
  0x6f   :  { %v708_v62 = vor.u32 %v815_v60, %v707_v59  ;;  %v709_v63 = vld [vmem:[#allocation12 + $0x70] sm:$0xf0]  ;;  %v715_v0 = vld [vmem:[#allocation12 + $0x68] sm:$0xf]  ;;  %v816_v1 = vld [vmem:[#allocation12 + $0x74] sm:$0xf0] }
  0x70   :  { %v712_v2 = vor.u32 %v813_v61, %v709_v63  ;;  %v716_v3 = vor.u32 %v816_v1, %v715_v0  ;;  %v814_v4 = vld [vmem:[#allocation12 + $0x6c] sm:$0xf]  ;;  %v717_v5 = vld [vmem:[#allocation12 + $0x78] sm:$0xf0]  ;;  %v691_v7 = vld [vmem:[#allocation12 + $0x40] sm:$0xf] }
  0x71   :  { %246 = vmatpush.bf16.msra.mxu0 %v796_v14  ;;  %475 = vmatpush.bf16.msra.mxu1 %v724_v50  ;;  %v720_v6 = vor.u32 %v814_v4, %v717_v5  ;;  %v811_v8 = vld [vmem:[#allocation12 + $0x4c] sm:$0xf0]  ;;  %v809_v9 = vld [vmem:[#allocation12 + $0x44] sm:$0xf]  ;;  %v693_v11 = vld [vmem:[#allocation12 + $0x50] sm:$0xf0] }
  0x72   :  { %488 = vmatpush.bf16.msra.mxu2 %v728_v54  ;;  %501 = vmatpush.bf16.msra.mxu3 %v732_v55  ;;  %v692_v10 = vor.u32 %v811_v8, %v691_v7  ;;  %v699_v12 = vld [vmem:[#allocation12 + $0x48] sm:$0xf]  ;;  %v812_v13 = vld [vmem:[#allocation12 + $0x54] sm:$0xf0]  ;;  %v696_v14 = vor.u32 %v809_v9, %v693_v11  ;;  %v701_v17 = vld [vmem:[#allocation12 + $0x58] sm:$0xf0] }
  0x73   :  { %v807_v20 = vld [vmem:[#allocation12 + $0x2c] sm:$0xf0]  ;;  %v677_v23 = vld [vmem:[#allocation12 + $0x30] sm:$0xf0]  ;;  %v683_v24 = vld [vmem:[#allocation12 + $0x28] sm:$0xf] }
  0x74   :  { %v808_v25 = vld [vmem:[#allocation12 + $0x34] sm:$0xf0]  ;;  %v806_v28 = vld [vmem:[#allocation12 + $0x2c] sm:$0xf]  ;;  %v685_v29 = vld [vmem:[#allocation12 + $0x38] sm:$0xf0] }
  0x75   :  { %247 = vmatpush.bf16.msra.mxu0 %v795_v15  ;;  %476 = vmatpush.bf16.msra.mxu1 %v708_v62  ;;  %v700_v15 = vor.u32 %v812_v13, %v699_v12  ;;  %v684_v27 = vor.u32 %v808_v25, %v683_v24  ;;  %v659_v30 = vld [vmem:[#allocation12] sm:$0xf]  ;;  %v688_v31 = vor.u32 %v806_v28, %v685_v29  ;;  %v803_v32 = vld [vmem:[#allocation12 + $0xc] sm:$0xf0]  ;;  %v801_v33 = vld [vmem:[#allocation12 + $0x4] sm:$0xf] }
  0x76   :  { %489 = vmatpush.bf16.msra.mxu2 %v712_v2  ;;  %502 = vmatpush.bf16.msra.mxu3 %v716_v3  ;;  %v660_v35 = vor.u32 %v803_v32, %v659_v30  ;;  %v667_v37 = vld [vmem:[#allocation12 + $0x8] sm:$0xf]  ;;  %v804_v38 = vld [vmem:[#allocation12 + $0x14] sm:$0xf0]  ;;  %v802_v39 = vld [vmem:[#allocation12 + $0xc] sm:$0xf] }
  0x77   :  { %v668_v40 = vor.u32 %v804_v38, %v667_v37  ;;  %v669_v41 = vld [vmem:[#allocation12 + $0x18] sm:$0xf0]  ;;  %v257_v45 = vshrl.u32 %v256_v42, 7  ;;  %v302_v60 = vld [vmem:[%s1230_s5] sm:$0xf]  ;;  %vm540_vm4 = vcmp.lt.s32.totalorder %v256_v42, 512 }
  0x78   :  { %v672_v43 = vor.u32 %v802_v39, %v669_v41  ;;  %v848_v44 = vld [vmem:[#allocation10] ss:$0 sm:$0xff]  ;;  %v467_v63 = vperm.slane %v302_v60, 3  ;;  %v465_v0 = vperm.slane %v302_v60, 1  ;;  %v466_v1 = vperm.slane %v302_v60, 2 }
  0x79   :  { %248 = vmatpush.bf16.msra.mxu0 %v794_v16  ;;  %v810_v16 = vld [vmem:[#allocation12 + $0x4c] sm:$0xf]  ;;  %477 = vmatpush.bf16.msra.mxu1 %v692_v10  ;;  %vm258_vm0 = vcmp.lt.s32.totalorder %v257_v45, 5  ;;  %v464_v2 = vperm.slane %v302_v60, 0 }
  0x7a   :  { %v704_v18 = vor.u32 %v810_v16, %v701_v17  ;;  %490 = vmatpush.bf16.msra.mxu2 %v696_v14  ;;  %503 = vmatpush.bf16.msra.mxu3 %v700_v15 }
  0x7d   :  { %249 = vmatpush.bf16.msra.mxu0 %v793_v19  ;;  %v675_v19 = vld [vmem:[#allocation12 + $0x20] sm:$0xf] }
  0x7e   :  { %504 = vmatpush.bf16.msra.mxu3 %v684_v27 }
  0x80   :  { %250 = vmatmul.bf16.vlgmr.msra.gmra.mxu0 %v173_v22  ;;  %v676_v22 = vor.u32 %v807_v20, %v675_v19 }
  0x81   :  { %511 = vmatpush.bf16.msrb.mxu0 %v784_v21  ;;  %v805_v21 = vld [vmem:[#allocation12 + $0x24] sm:$0xf] }
  0x82   :  { %v680_v26 = vor.u32 %v805_v21, %v677_v23  ;;  %478 = vmatpush.bf16.msra.mxu1 %v676_v22  ;;  %505 = vmatpush.bf16.msra.mxu3 %v668_v40 }
  0x84   :  { %491 = vmatpush.bf16.msra.mxu2 %v680_v26 }
  0x85   :  { %512 = vmatpush.bf16.msrb.mxu0 %v768_v34  ;;  %v661_v34 = vld [vmem:[#allocation12 + $0x10] sm:$0xf0] }
  0x86   :  { %v664_v36 = vor.u32 %v801_v33, %v661_v34  ;;  %479 = vmatpush.bf16.msra.mxu1 %v660_v35 }
  0x88   :  { %492 = vmatpush.bf16.msra.mxu2 %v664_v36 }
  0x89   :  { %513 = vmatpush.bf16.msrb.mxu0 %v752_v46 }
  0x8d   :  { %514 = vmatpush.bf16.msrb.mxu0 %v736_v58 }
  0x91   :  { %515 = vmatpush.bf16.msrb.mxu0 %v720_v6 }
  0x95   :  { %516 = vmatpush.bf16.msrb.mxu0 %v704_v18 }
  0x99   :  { %517 = vmatpush.bf16.msrb.mxu0 %v688_v31 }
  0x9d   :  { %518 = vmatpush.bf16.msrb.mxu0 %v672_v43 }
  0xfd   :  { %v251_v46 = vpop.f32.mrf.mxu0 }
  0xfe   :  { %v252_v47 = vadd.f32 %v848_v44, %v251_v46 }
 0x100   :  { %v255_v48 = vmax.f32 %v252_v47, 0.0 }
 0x102   :  { %v259_v49 = vsel %vm258_vm0, %v255_v48, 0.0 }
 0x103   :  { %v260_v50 = vrot.slane %v259_v49, 4 }
 0x105   :  { %v261_v51 = vadd.f32 %v260_v50, %v259_v49  ;;  %v253_v52 = vpop.f32.mrf.mxu0 }
 0x107   :  { %v262_v53 = vrot.slane %v261_v51, 2 }
 0x109   :  { %v263_v54 = vadd.f32 %v262_v53, %v261_v51 }
 0x10b   :  { %v264_v55 = vrot.slane %v263_v54, 1 }
 0x10d   :  { %v265_v56 = vadd.f32 %v264_v55, %v263_v54 }
 0x10f   :  { %v266_v57 = vmul.f32 0.2, %v265_v56 }
 0x111   :  { %267 = vst [vmem:[#allocation3] sm:$0x1] %v266_v57 }
 0x118   :  { %v268_v58 = vld [vmem:[#allocation3] sm:$0x1] }
 0x119   :  { %v269_v59 = vpack.c.bf16 %v268_v58, %v268_v58 }
 0x11b   :  { %480 = vmatmul.bf16.vlgmr.msra.gmra.mxu1 %v269_v59  ;;  %493 = vmatmul.bf16.vlgmr.msra.gmra.mxu2 %v269_v59 }
 0x11c   :  { %506 = vmatmul.bf16.vlgmr.msra.gmra.mxu3 %v269_v59  ;;  %519 = vmatmul.bf16.vlgmr.msrb.gmra.mxu0 %v269_v59 }
 0x198   :  { %v481_v61 = vpop.f32.mrf.mxu1 }
 0x199   :  { %v520_v62 = vpop.f32.mrf.mxu0  ;;  %v482_v9 = vadd.f32 %v481_v61, %v464_v2 }
 0x19a   :  { %v521_v3 = vadd.f32 %v520_v62, %v467_v63 }
 0x19c   :  { %v530_v12 = vrot.slane %v521_v3, 5 }
 0x19e   :  { %v494_v4 = vpop.f32.mrf.mxu2 }
 0x19f   :  { %v495_v5 = vadd.f32 %v494_v4, %v465_v0  ;;  %v507_v6 = vpop.f32.mrf.mxu3 }
 0x1a0   :  { %v508_v7 = vadd.f32 %v507_v6, %v466_v1  ;;  %v483_v8 = vpop.f32.mrf.mxu1 }
 0x1a1   :  { %v528_v10 = vrot.slane %v495_v5, 7  ;;  %v522_v11 = vpop.f32.mrf.mxu0 }
 0x1a2   :  { %v529_v13 = vrot.slane %v508_v7, 6 }
 0x1a3   :  { %v532_v14 = vsel %vm531_vm1, %v482_v9, %v528_v10 }
 0x1a4   :  { %v534_v15 = vsel %vm533_vm2, %v529_v13, %v530_v12 }
 0x1a5   :  { %v536_v16 = vsel %vm535_vm3, %v532_v14, %v534_v15 }
 0x1a6   :  { %v496_v17 = vpop.f32.mrf.mxu2  ;;  %542 = vst.msk [vmem:[#allocation13] sm:$0xf] %vm540_vm4, %v536_v16 }
 0x1a7   :  { %v509_v18 = vpop.f32.mrf.mxu3  ;;  %553 = dma.vmem_to_hbm [thread:$0]  %s549_s23, 64, %s551_s19, [#allocation9]  }
 0x1a8   :  { %1093 = dma.done.wait [#allocation9], 64  }
 0x1a9   :  { %1094 = vsyncadd [#allocation9], 4294967232 }
 0x1aa   :  { %558 = vsyncpa [#allocation8], 1 }
 0x1ab   :  { %559 = vsyncpa [#allocation11], 1 }
 0x1ac   :  { %560 = vsyncpa [#allocation9], 1 }
 0x1ad   :  { %561 = vsyncmov [#allocation4] }
 0x1b0   :  { %s562_s6 = vpop.sfrf %561 }
 0x1b1   :  { %p785_p11 = scmp.ne.s32.totalorder %s562_s6, 0 }
 0x1b3   :  { %566 = shalt.err (%p785_p11)  }
 0x1b4   :  { %568 = vsyncmov [#allocation4 + $0x1] }
 0x1b7   :  { %s569_s27 = vpop.sfrf %568 }
 0x1b8   :  { %p786_p12 = scmp.ne.s32.totalorder %s569_s27, 0 }
 0x1ba   :  { %573 = shalt.err (%p786_p12)  }
 0x1bb   :  { %575 = vsyncmov [#allocation4 + $0x2] }
 0x1be   :  { %s576_s22 = vpop.sfrf %575 }
 0x1bf   :  { %p787_p13 = scmp.ne.s32.totalorder %s576_s22, 0 }
 0x1c1   :  { %580 = shalt.err (%p787_p13)  }
 0x1c2   :  { %582 = vsyncmov [#allocation4 + $0x3] }
 0x1c5   :  { %s583_s28 = vpop.sfrf %582 }
 0x1c6   :  { %p788_p0 = scmp.ne.s32.totalorder %s583_s28, 0 }
 0x1c8   :  { %587 = shalt.err (%p788_p0)  }
 0x1c9   :  { %589 = vsyncmov [#allocation4 + $0x4] }
 0x1cc   :  { %s590_s29 = vpop.sfrf %589 }
 0x1cd   :  { %p789_p1 = scmp.ne.s32.totalorder %s590_s29, 0 }
 0x1cf   :  { %594 = shalt.err (%p789_p1)  }
 0x1d0   :  { %596 = vsyncmov [#allocation4 + $0x5] }
 0x1d3   :  { %s597_s7 = vpop.sfrf %596 }
 0x1d4   :  { %p790_p2 = scmp.ne.s32.totalorder %s597_s7, 0 }
 0x1d6   :  { %601 = shalt.err (%p790_p2)  }
 0x1d7   :  { %603 = vsyncmov [#allocation4 + $0x6] }
 0x1da   :  { %s604_s0 = vpop.sfrf %603 }
 0x1db   :  { %p791_p3 = scmp.ne.s32.totalorder %s604_s0, 0 }
 0x1dd   :  { %608 = shalt.err (%p791_p3)  }
 0x1de   :  { %610 = vsyncmov [#allocation4 + $0x7] }
 0x1e1   :  { %s611_s8 = vpop.sfrf %610 }
 0x1e2   :  { %p792_p4 = scmp.ne.s32.totalorder %s611_s8, 0 }
 0x1e4   :  { %615 = shalt.err (%p792_p4)  }

</bundles_post_ra>
